<compile_context>
chip_gen: v7x
topology: tpu7x:2x2x1
jax: 0.10.0
libtpu: 0.0.40
codegen_flags: <defaults>
</compile_context>

<pallas_src>
import functools

import jax
import jax.numpy as jnp
from jax.experimental import pallas as pl
from jax.experimental.pallas import tpu as pltpu


def _round_up(n, m):
    return ((n + m - 1) // m) * m


# ---------------------------------------------------------------------------
# Kernel bodies
# ---------------------------------------------------------------------------

def _ln_pipeline(x_int, bint, two_pow_shift, inv_pow_shift):
    """Row-local integer LayerNorm pipeline (round_ste / floor_ste forwards)."""
    mean_int = jnp.round(jnp.mean(x_int, axis=-1, keepdims=True))      # (tm, 1)
    y_int = x_int - mean_int
    y_sh = jnp.floor(y_int * inv_pow_shift)                            # 2**-shift: exact pow2 mul
    var_int = jnp.sum(y_sh * y_sh, axis=-1, keepdims=True)             # (tm, 1)
    # TODO(synk): overflow_fallback/set_shift (bumps the `shift` buffer when
    # var_int >= 2**32 and recomputes) is stateful, data-dependent calibration;
    # we assume `shift` is already calibrated (as after .fix()).
    std_int = jnp.floor(jnp.sqrt(var_int)) * two_pow_shift
    factor = jnp.floor(2.0 ** 31 / std_int)                            # per-row, kept exact
    return jnp.floor(y_int * factor * 0.5) + bint


def _full_kernel_static(x_ref, inv_s_ref, sf_ref, bint_ref, out_ref, norm_ref,
                        *, two_pow_shift, inv_pow_shift):
    """(tm, D) row tile: module's literal return value + normalized tensor."""
    x_int = x_ref[...].astype(jnp.float32) * inv_s_ref[...]
    sf = sf_ref[...]
    y_int = _ln_pipeline(x_int, bint_ref[...], two_pow_shift, inv_pow_shift)
    norm_ref[...] = (y_int * sf).astype(norm_ref.dtype)
    out_ref[...] = (x_int * sf).astype(out_ref.dtype)


def _full_kernel_smem(scal_ref, x_ref, inv_s_ref, sf_ref, bint_ref, out_ref, norm_ref):
    """Same as above, but 2**shift / 2**-shift come from SMEM (traced shift)."""
    x_int = x_ref[...].astype(jnp.float32) * inv_s_ref[...]
    sf = sf_ref[...]
    y_int = _ln_pipeline(x_int, bint_ref[...], scal_ref[0, 0], scal_ref[0, 1])
    norm_ref[...] = (y_int * sf).astype(norm_ref.dtype)
    out_ref[...] = (x_int * sf).astype(out_ref.dtype)


def _scale_only_kernel(x_ref, inv_s_ref, sf_ref, out_ref):
    # The module's literal return value `x_int * scaling_factor` does not depend on
    # the integer-LN pipeline (that only feeds the normalized tensor), so the
    # single-output fast path skips it entirely.
    x_int = x_ref[...].astype(jnp.float32) * inv_s_ref[...]
    out_ref[...] = (x_int * sf_ref[...]).astype(out_ref.dtype)


# ---------------------------------------------------------------------------
# Wrapper
# ---------------------------------------------------------------------------

def _vmem_limit_bytes():
    try:
        cap = int(pltpu.get_tpu_info().vmem_capacity_bytes)
    except Exception:
        cap = 64 * 1024 * 1024  # conservative (v7x-sized) fallback
    # <= ~48 MiB on v7x (64 MiB/TC), up to 96 MiB on v5e/v6e (128 MiB).
    return int(min(cap * 3 // 4, 96 * 1024 * 1024))


def _choose_tm(M, D, in_itemsize, n_big_outputs, out_itemsize, vmem_limit):
    """Largest 8-aligned row tile that fits the double-buffered VMEM budget,
    capped so the parallel row grid has >= 2 steps (v7x megacore)."""
    if M <= 8:
        return int(M)  # single block equal to the full array dims
    per_row = 2 * (in_itemsize + n_big_outputs * out_itemsize) * D  # double-buffered streams
    budget = max(vmem_limit - (4 << 20), 4 << 20)                    # headroom for (1,D) consts
    tm = min(budget // per_row, 2048)
    tm = min(tm, _round_up(pl.cdiv(M, 2), 8))                        # keep grid >= 2
    tm = max(8, (tm // 8) * 8)
    return int(min(tm, _round_up(M, 8)))


def int_layernorm_forward(x, weight, bias, scaling_factor, shift=0.0,
                          *, tm=None, return_normalized=False, interpret=False):
    """IntLayerNorm.forward (quant_mode='symmetric', scaling_factor provided).

    Returns the module's return value x_int * (sqrt(D)/2**30 * weight); with
    return_normalized=True also returns the normalized tensor (y_int * scale).
    """
    # TODO(synk): quant_mode='none' / scaling_factor=None float-LayerNorm fallback not ported.
    orig_shape = x.shape
    D = orig_shape[-1]
    x2d = x.reshape(-1, D)
    if not jnp.issubdtype(x2d.dtype, jnp.floating):
        x2d = x2d.astype(jnp.float32)
    out_dtype = x2d.dtype           # bf16 in -> bf16 out (halves output HBM traffic too)
    M = x2d.shape[0]

    w = jnp.asarray(weight, jnp.float32).reshape(-1)
    b = jnp.asarray(bias, jnp.float32).reshape(-1)
    s_in = jnp.broadcast_to(jnp.asarray(scaling_factor, jnp.float32).reshape(-1), (D,))
    inv_s = (1.0 / s_in).reshape(1, D)   # hoisted reciprocal: per-element divide -> VALU mul

    dim_sqrt = jnp.sqrt(jnp.float32(D))
    sf0 = dim_sqrt / jnp.float32(2.0 ** 30)
    sf_out = (sf0 * w).reshape(1, D)

    in_itemsize = x2d.dtype.itemsize
    out_itemsize = jnp.dtype(out_dtype).itemsize
    n_big_outputs = 2 if return_normalized else 1
    vmem_limit = _vmem_limit_bytes()
    if tm is None:
        tm = _choose_tm(M, D, in_itemsize, n_big_outputs, out_itemsize, vmem_limit)

    grid = (pl.cdiv(M, tm),)             # partial last block handled by Pallas (no jnp.pad copy)
    row_spec = pl.BlockSpec((tm, D), lambda i: (i, 0))
    const_spec = pl.BlockSpec((1, D), lambda i: (0, 0))
    out_struct = jax.ShapeDtypeStruct((M, D), out_dtype)
    compiler_params = pltpu.CompilerParams(
        dimension_semantics=("parallel",),
        vmem_limit_bytes=vmem_limit)

    if not return_normalized:
        out2d = pl.pallas_call(
            _scale_only_kernel,
            out_shape=out_struct,
            grid=grid,
            in_specs=[row_spec, const_spec, const_spec],
            out_specs=row_spec,
            compiler_params=compiler_params,
            cost_estimate=pl.CostEstimate(
                flops=2 * M * D, transcendentals=0,
                bytes_accessed=(in_itemsize + out_itemsize) * M * D + 8 * D),
            interpret=interpret,
        )(x2d, inv_s, sf_out)
        return out2d.reshape(orig_shape)

    # Hoisted per-channel constant for the normalized tensor.
    # NOTE: weight == 0 gives inf/NaN in bias_int (matches the reference semantics).
    bias_int = jnp.floor((b / w) / sf0).reshape(1, D)

    # shift: post-calibration it is a concrete scalar -> bake 2**±shift as constants
    # so `* 2**-shift` / `* 2**shift` constant-fold (exactly 1.0 when shift == 0).
    try:
        sh = float(jnp.asarray(shift, jnp.float32).reshape(-1)[0])
        shift_is_static = True
    except Exception:       # traced shift (inside jit with shift as an argument)
        shift_is_static = False

    if shift_is_static:
        kernel = functools.partial(_full_kernel_static,
                                   two_pow_shift=float(2.0 ** sh),
                                   inv_pow_shift=float(2.0 ** -sh))
        extra_in, extra_specs = (), ()
    else:
        shift_f = jnp.asarray(shift, jnp.float32).reshape(-1)[0]
        scalars = jnp.stack([jnp.exp2(shift_f), jnp.exp2(-shift_f)]).reshape(1, 2)
        kernel = _full_kernel_smem
        extra_in = (scalars,)
        extra_specs = (pl.BlockSpec(memory_space=pltpu.SMEM),)

    out2d, norm2d = pl.pallas_call(
        kernel,
        out_shape=(out_struct, out_struct),
        grid=grid,
        in_specs=[*extra_specs, row_spec, const_spec, const_spec, const_spec],
        out_specs=(row_spec, row_spec),
        compiler_params=compiler_params,
        cost_estimate=pl.CostEstimate(
            flops=12 * M * D, transcendentals=2 * M,
            bytes_accessed=(in_itemsize + 2 * out_itemsize) * M * D + 12 * D),
        interpret=interpret,
    )(*extra_in, x2d, inv_s, sf_out, bias_int)

    return out2d.reshape(orig_shape), norm2d.reshape(orig_shape)


# ---------------------------------------------------------------------------
# Pure-JAX reference (transliteration of IntLayerNorm.forward, symmetric path)
# ---------------------------------------------------------------------------

def _reference(x, weight, bias, scaling_factor, shift):
    D = x.shape[-1]
    dim_sqrt = jnp.sqrt(jnp.float32(D))
    s = jnp.broadcast_to(jnp.asarray(scaling_factor, jnp.float32).reshape(-1), (D,))
    x_int = x / s.reshape(1, 1, -1)
    mean_int = jnp.round(jnp.mean(x_int, axis=2, keepdims=True))
    y_int = x_int - mean_int
    y_sh = jnp.floor(y_int / 2.0 ** shift)
    var_int = jnp.sum(y_sh ** 2, axis=2, keepdims=True)
    std_int = jnp.floor(jnp.sqrt(var_int)) * 2.0 ** shift
    factor = jnp.floor(2.0 ** 31 / std_int)
    y_int = jnp.floor(y_int * factor / 2.0)
    sf = dim_sqrt / 2.0 ** 30
    bias_int = jnp.floor((bias / weight) / sf)
    y_int = y_int + bias_int
    sf = sf * weight
    x_norm = y_int * sf            # the value the module computes into `x`
    out = x_int * sf               # the module's literal return value
    return out, x_norm


if __name__ == "__main__":
    # IntLayerNorm(output_bit=8, quant_mode='symmetric'); shift buffer = 0 at init.
    # S=100 deliberately not a multiple of the row tile -> exercises the partial
    # last block path (no jnp.pad).
    B, S, D = 2, 100, 128
    key = jax.random.PRNGKey(0)
    kx, kw, kb = jax.random.split(key, 3)
    x = jax.random.normal(kx, (B, S, D), dtype=jnp.float32)
    weight = 1.0 + 0.1 * jax.random.normal(kw, (D,), dtype=jnp.float32)   # ln.weight
    bias = 0.1 * jax.random.normal(kb, (D,), dtype=jnp.float32)           # ln.bias
    scaling_factor = jnp.float32(0.02)   # incoming activation scale (scalar, as in I-BERT)
    shift = 0.0                          # self.shift buffer value (post-calibration)

    # Fast path (common case): single-output kernel, no normalized tensor written.
    out_fast = int_layernorm_forward(x, weight, bias, scaling_factor, shift)
    # Full path: also emit the normalized tensor for validation.
    out, x_norm = int_layernorm_forward(x, weight, bias, scaling_factor, shift,
                                        return_normalized=True)
    jax.block_until_ready((out_fast, out, x_norm))

    ref_out, ref_norm = _reference(x, weight, bias, scaling_factor, shift)
    assert out_fast.shape == (B, S, D) and out.shape == (B, S, D) and x_norm.shape == (B, S, D)
    # Module's literal return value: tight check (x*(1/s) vs x/s differs by <= ~1 ulp).
    assert jnp.allclose(out_fast, ref_out, rtol=1e-4, atol=1e-9), "fast-path output mismatch"
    assert jnp.allclose(out, ref_out, rtol=1e-4, atol=1e-9), "output mismatch vs JAX reference"
    # Normalized tensor: floor/round applied to reduction results can flip by one
    # integer step when kernel vs XLA reduction orders differ -> modest tolerance.
    assert jnp.allclose(x_norm, ref_norm, rtol=2e-2, atol=5e-2), "normalized mismatch vs JAX reference"
    print("KERNEL_OK")
</pallas_src>

<mosaic_0001>
module attributes {stable_mosaic.version = 11 : i64} {
  func.func @_scale_only_kernel(%arg0: i32, %arg1: memref<104x128xf32, #tpu.memory_space<vmem>>, %arg2: memref<1x128xf32, #tpu.memory_space<vmem>>, %arg3: memref<1x128xf32, #tpu.memory_space<vmem>>, %arg4: memref<104x128xf32, #tpu.memory_space<vmem>>) attributes {dimension_semantics = [#tpu.dimension_semantics<parallel>], iteration_bounds = array<i64: 2>, scalar_prefetch = 0 : i64, scratch_operands = 0 : i64, tpu.core_type = #tpu.core_type<tc>, window_params = [{transform_indices = @transform_0, window_bounds = array<i64: 104, 128>}, {pipeline_mode = #tpu.pipeline_mode<synchronous>, transform_indices = @transform_1, window_bounds = array<i64: 1, 128>}, {pipeline_mode = #tpu.pipeline_mode<synchronous>, transform_indices = @transform_2, window_bounds = array<i64: 1, 128>}, {transform_indices = @transform_3, window_bounds = array<i64: 104, 128>}]} {
    %c0 = arith.constant 0 : index
    %c0_0 = arith.constant 0 : index
    %0 = vector.load %arg1[%c0, %c0_0] : memref<104x128xf32, #tpu.memory_space<vmem>>, vector<104x128xf32>
    %c0_1 = arith.constant 0 : index
    %c0_2 = arith.constant 0 : index
    %1 = vector.load %arg2[%c0_1, %c0_2] : memref<1x128xf32, #tpu.memory_space<vmem>>, vector<1x128xf32>
    %2 = vector.broadcast %1 : vector<1x128xf32> to vector<104x128xf32>
    %3 = arith.mulf %0, %2 : vector<104x128xf32>
    %c0_3 = arith.constant 0 : index
    %c0_4 = arith.constant 0 : index
    %4 = vector.load %arg3[%c0_3, %c0_4] : memref<1x128xf32, #tpu.memory_space<vmem>>, vector<1x128xf32>
    %5 = vector.broadcast %4 : vector<1x128xf32> to vector<104x128xf32>
    %6 = arith.mulf %3, %5 : vector<104x128xf32>
    %c0_5 = arith.constant 0 : index
    %c0_6 = arith.constant 0 : index
    %7 = vector.load %arg4[%c0_5, %c0_6] : memref<104x128xf32, #tpu.memory_space<vmem>>, vector<104x128xf32>
    tpu.vector_store %arg4[%c0_5, %c0_6], %6 {strides = array<i32>} : memref<104x128xf32, #tpu.memory_space<vmem>>, vector<104x128xf32>,
    return
  }
  func.func @transform_0(%arg0: i32) -> (i32, i32) {
    %c0_i32 = arith.constant 0 : i32
    %c0_i32_0 = arith.constant 0 : i32
    return %arg0, %c0_i32 : i32, i32
  }
  func.func @transform_1(%arg0: i32) -> (i32, i32) {
    %c0_i32 = arith.constant 0 : i32
    %c0_i32_0 = arith.constant 0 : i32
    %c0_i32_1 = arith.constant 0 : i32
    return %c0_i32, %c0_i32_0 : i32, i32
  }
  func.func @transform_2(%arg0: i32) -> (i32, i32) {
    %c0_i32 = arith.constant 0 : i32
    %c0_i32_0 = arith.constant 0 : i32
    %c0_i32_1 = arith.constant 0 : i32
    return %c0_i32, %c0_i32_0 : i32, i32
  }
  func.func @transform_3(%arg0: i32) -> (i32, i32) {
    %c0_i32 = arith.constant 0 : i32
    %c0_i32_0 = arith.constant 0 : i32
    return %arg0, %c0_i32 : i32, i32
  }
}

</mosaic_0001>

<bundles_post_ra>
// kernel: tpu_custom_call.1
= control target key start
LH: loop header
LB: loop body
LE: loop exit
PB: predicated region body
PF: predicated region fallthrough
CT: control target
= control target key end

     0   :  { %8 = vsyncpa [#allocation3], 0  ;;  %s747_s0 = inlined_call_operand.hbm [shape: f32[200,128], index: 0, kind: input, shape index: {}]   ;;  %s748_s1 = inlined_call_operand.vmem [shape: f32[1,128], index: 1, kind: input, shape index: {}]   ;;  %s749_s2 = inlined_call_operand.vmem [shape: f32[1,128], index: 2, kind: input, shape index: {}]   ;;  %s750_s3 = inlined_call_operand.hbm [shape: f32[200,128], index: 3, kind: output, shape index: {}]  }
   0x1   :  { %10 = vsyncpa [#allocation3 + $0x1], 0 }
   0x2   :  { %11 = vsyncpa [#allocation4], 0 }
   0x3   :  { %13 = vsyncpa [#allocation4 + $0x1], 0  ;;  %s551_s12 = smov 0   ;;  %s553_s13 = smov 0  }
   0x4   :  { %s555_s14 = smov 0   ;;  %s557_s15 = smov 0  }
   0x5 LB: > { %s572_s16 = sadd.s32 4294967295, %s523_s15   ;;  %s364_s17 = sadd.s32 4294967294, %s523_s15   ;;  %s523_s15 = sphi %s557_s15, %s760_s15   ;;  %s519_s14 = sphi %s555_s14, %s759_s14   ;;  %s515_s13 = sphi %s553_s13, %s758_s13   ;;  %s511_s12 = sphi %s551_s12, %s757_s12  }
   0x6   : > { %s576_s18 = sadd.s32 1, %s523_s15   ;;  %s26_s19 = sadd.s32 1, %s519_s14 }
   0x7   : > { %s23_s20 = ssub.s32 %s523_s15, %s576_s18  ;;  %p33_p0 = scmp.ne.s32.totalorder %s519_s14, %s515_s13 }
   0x8   : > { %p24_p1 = scmp.eq.s32.totalorder %s23_s20, 0  ;;  %p34_p2 = scmp.eq.s32.totalorder %s523_s15, 0 }
   0x9   : > { %p39_p3 = scmp.ne.s32.totalorder %s515_s13, %s511_s12  ;;  %p40_p4 = scmp.eq.s32.totalorder %s572_s16, 0 }
   0xa   : > { %s588_s21 = scalar_select %p24_p1, %s519_s14, %s26_s19  }
   0xb   : > { %p35_p5 = por %p34_p2, %p33_p0  ;;  %p590_p6 = por %p40_p4, %p39_p3 }
   0xc   : > { %p105_p7 = scmp.eq.s32.totalorder %s572_s16, 1  ;;  %p111_p8 = scmp.eq.s32.totalorder %s364_s17, 1 }
   0xd   : > { %p751_p11 = scmp.ge.s32.totalorder %s523_s15, 2 }
   0xe   : > { %p595_p9 = por %p105_p7, %p33_p0  ;;  %p599_p10 = por %p111_p8, %p39_p3 }
   0xf   : > { %133 = sbr.rel (%p751_p11) target bundleno = 57 (0x39), region = 24 }
  0x10   : > { %s754_s24 = scalar_select %p599_p10, 1, 0 }
  0x16   : > { %136 = sbr.rel (!%p35_p5) target bundleno = 57 (0x39), region = 28  ;;  %s137_s25 = sand.u32 (%p35_p5), 1, %s519_s14  }
  0x17   : > { %s142_s26 = smul.u32 (%p35_p5), 13, %s523_s15  ;;  %s611_s4 = scalar_lea.sflag (%p35_p5), [#allocation3], %s137_s25 }
  0x18   : > { %s384_s27 = smul.u32 (%p35_p5), 104, %s137_s25 }
  0x19   : > { %s143_s28 = ssub.s32 (%p35_p5), 25, %s142_s26 }
  0x1a   : > { %p144_p12 = scmp.lt.s32.totalorder (%p35_p5), %s143_s28, 13  ;;  %s141_s5 = scalar_lea.vmem (%p35_p5), [#allocation2], %s384_s27 }
  0x1d   : > { %s762_s28 = smov (!%p144_p12, %s143_s28), 13 }
  0x1e   : > { %s608_s29 = sshll.u32 %s762_s28, 7 }
  0x1f   : > { %s148_s30 = ssub.s32 1664, %s608_s29 }
  0x20   : > { %149 = vsyncadd %s611_s4, %s148_s30  ;;  %p368_p13 = scmp.ne.s32.totalorder %s608_s29, 0  ;;  %s382_s6 = smul.u32 1664, %s523_s15 }
  0x21   : > { %s154_s7 = sshll.u32 %s141_s5, 4  ;;  %s433_s20 = scalar_lea.hbm %s747_s0, 3200  ;;  %s621_s7 = int_to_ptr.vmem [resolvable:$true] %s154_s7 }
  0x22   : > { %s619_s10 = scalar_lea.hbm %s747_s0, %s382_s6 }
  0x23   : > { %s429_s11 = scalar_lea.hbm %s619_s10, %s608_s29  ;;  %p434_p3 = scmp.lt.u32.totalorder %s619_s10, %s747_s0 }
  0x24   : > { %p430_p0 = scmp.ne.s32.totalorder %s619_s10, %s429_s11  ;;  %p435_p4 = scmp.lt.u32.totalorder %s433_s20, %s429_s11 }
  0x25   : > { %p437_p7 = scmp.lt.u32.totalorder %s429_s11, %s619_s10 }
  0x26   : > { %p431_p1 = pnand %p430_p0, %p368_p13  ;;  %p436_p5 = por %p435_p4, %p434_p3 }
  0x28   : > { %p432_p2 = pneg %p431_p1  ;;  %p438_p8 = por %p437_p7, %p436_p5 }
  0x2a   : > { %p439_p12 = pnand %p438_p8, %p432_p2 }
  0x2c   : > { %442 = shalt.err (!%p439_p12)
}
  0x2d   : > { %s443_s27 = scalar_lea.vmem %s621_s7, %s608_s29  ;;  %s525_s28 = smov [#allocation2]  }
  0x2e   : > { %p444_p0 = scmp.ne.s32.totalorder %s621_s7, %s443_s27  ;;  %s447_s30 = sshll.u32 %s525_s28, 4  ;;  %s448_s30 = int_to_ptr.vmem [resolvable:$false] %s447_s30 }
  0x2f   : > { %s449_s5 = scalar_lea.vmem %s448_s30, 3328  ;;  %p450_p10 = scmp.lt.s32.totalorder %s621_s7, %s448_s30 }
  0x30   : > { %p445_p1 = pnand %p444_p0, %p368_p13  ;;  %p451_p3 = scmp.lt.s32.totalorder %s449_s5, %s443_s27 }
  0x32   : > { %p446_p11 = pneg %p445_p1  ;;  %p452_p4 = por %p451_p3, %p450_p10 }
  0x34   : > { %p453_p5 = pnand %p452_p4, %p446_p11 }
  0x36   : > { %456 = shalt.err (!%p453_p5)
}
  0x37   : > { %s526_s6 = smov 128   ;;  %s527_s8 = smov 8  }
  0x38   : > { %160 = dma.hbm_to_vmem [thread:$0]  (%p368_p13), %s619_s10, %s608_s29, %s621_s7, %s611_s4, %s526_s6, %s526_s6, %s527_s8  }
  0x39 PF: > { %p372_p2 = scmp.ge.s32.totalorder %s523_s15, 1  ;;  %p162_p7 = scmp.lt.s32.totalorder %s523_s15, 3 }
  0x3b   : > { %p163_p8 = pnand %p372_p2, %p162_p7 }
  0x3c   : > { %s651_s9 = sand.u32 (!%p163_p8), 1, %s515_s13  }
  0x3d   : > { %166 = sbr.rel (%p163_p8) target bundleno = 110 (0x6e), region = 32  ;;  %s169_s17 = scalar_lea.sflag (!%p163_p8), [#allocation3], %s651_s9 }
  0x3e   : > { %s385_s11 = smul.u32 (!%p163_p8), 104, %s651_s9 }
  0x40   : > { %s172_s19 = scalar_lea.vmem (!%p163_p8), [#allocation2], %s385_s11 }
  0x44   : > { %502 = dma.done.wait (%p590_p6), %s169_s17, 1664  }
  0x45   : > { %504 = vsyncadd (%p590_p6), %s169_s17, 4294965632  ;;  %v205_v0 = vld [vmem:[%s172_s19] sm:$0xff]  ;;  %v206_v4 = vld [vmem:[%s172_s19 + $0x8] sm:$0xff]  ;;  %s669_s22 = scalar_lea.vmem [#allocation5], %s385_s11  ;;  %s272_s20 = scalar_lea.sflag [#allocation4], %s651_s9 }
  0x46   : > { %v373_v1 = vld [vmem:[%s748_s1] ss:$0 sm:$0xff]  ;;  %v207_v5 = vld [vmem:[%s172_s19 + $0x10] sm:$0xff]  ;;  %v210_v11 = vld [vmem:[%s172_s19 + $0x28] sm:$0xff]  ;;  %s279_s25 = smul.u32 (%p595_p9), 13, %s572_s16 }
  0x47   : > { %v374_v2 = vld [vmem:[%s749_s2] ss:$0 sm:$0xff]  ;;  %v225_v3 = vmul.f32 %v373_v1, %v205_v0  ;;  %v226_v7 = vmul.f32 %v373_v1, %v206_v4  ;;  %v227_v8 = vmul.f32 %v373_v1, %v207_v5  ;;  %v211_v12 = vld [vmem:[%s172_s19 + $0x30] sm:$0xff]  ;;  %v230_v15 = vmul.f32 %v373_v1, %v210_v11  ;;  %v214_v19 = vld [vmem:[%s172_s19 + $0x48] sm:$0xff] }
  0x48   : > { %v208_v6 = vld [vmem:[%s172_s19 + $0x18] sm:$0xff]  ;;  %v209_v10 = vld [vmem:[%s172_s19 + $0x20] sm:$0xff]  ;;  %v231_v16 = vmul.f32 %v373_v1, %v211_v12  ;;  %v215_v24 = vld [vmem:[%s172_s19 + $0x50] sm:$0xff]  ;;  %v234_v32 = vmul.f32 %v373_v1, %v214_v19  ;;  %s280_s26 = ssub.s32 (%p595_p9), 25, %s279_s25 }
  0x49   : > { %v228_v9 = vmul.f32 %v373_v1, %v208_v6  ;;  %v245_v13 = vmul.f32 %v374_v2, %v225_v3  ;;  %v229_v14 = vmul.f32 %v373_v1, %v209_v10  ;;  %v212_v17 = vld [vmem:[%s172_s19 + $0x38] sm:$0xff]  ;;  %v213_v18 = vld [vmem:[%s172_s19 + $0x40] sm:$0xff]  ;;  %v246_v20 = vmul.f32 %v374_v2, %v226_v7  ;;  %p281_p6 = scmp.lt.s32.totalorder (%p595_p9), %s280_s26, 13 }
  0x4a   : > { %v247_v21 = vmul.f32 %v374_v2, %v227_v8  ;;  %v232_v23 = vmul.f32 %v373_v1, %v212_v17  ;;  %v216_v25 = vld [vmem:[%s172_s19 + $0x58] sm:$0xff]  ;;  %v217_v26 = vld [vmem:[%s172_s19 + $0x60] sm:$0xff]  ;;  %v250_v28 = vmul.f32 %v374_v2, %v230_v15  ;;  %v251_v29 = vmul.f32 %v374_v2, %v231_v16 }
  0x4b   : > { %v248_v22 = vmul.f32 %v374_v2, %v228_v9  ;;  %258 = vst [vmem:[%s669_s22] sm:$0xff] %v245_v13  ;;  %v249_v27 = vmul.f32 %v374_v2, %v229_v14  ;;  %v233_v30 = vmul.f32 %v373_v1, %v213_v18  ;;  %259 = vst [vmem:[%s669_s22 + $0x8] sm:$0xff] %v246_v20  ;;  %278 = sbr.rel (!%p595_p9) target bundleno = 110 (0x6e), region = 40 }
  0x4c   : > { %260 = vst [vmem:[%s669_s22 + $0x10] sm:$0xff] %v247_v21  ;;  %v252_v31 = vmul.f32 %v374_v2, %v232_v23  ;;  %v235_v33 = vmul.f32 %v373_v1, %v215_v24  ;;  %v236_v34 = vmul.f32 %v373_v1, %v216_v25  ;;  %263 = vst [vmem:[%s669_s22 + $0x28] sm:$0xff] %v250_v28 }
  0x4d   : > { %261 = vst [vmem:[%s669_s22 + $0x18] sm:$0xff] %v248_v22  ;;  %262 = vst [vmem:[%s669_s22 + $0x20] sm:$0xff] %v249_v27  ;;  %v253_v35 = vmul.f32 %v374_v2, %v233_v30  ;;  %v237_v36 = vmul.f32 %v373_v1, %v217_v26  ;;  %v254_v37 = vmul.f32 %v374_v2, %v234_v32 }
  0x4e   : > { %264 = vst [vmem:[%s669_s22 + $0x30] sm:$0xff] %v251_v29  ;;  %265 = vst [vmem:[%s669_s22 + $0x38] sm:$0xff] %v252_v31  ;;  %v255_v38 = vmul.f32 %v374_v2, %v235_v33  ;;  %v256_v39 = vmul.f32 %v374_v2, %v236_v34 }
  0x4f   : > { %266 = vst [vmem:[%s669_s22 + $0x40] sm:$0xff] %v253_v35  ;;  %v257_v40 = vmul.f32 %v374_v2, %v237_v36  ;;  %267 = vst [vmem:[%s669_s22 + $0x48] sm:$0xff] %v254_v37 }
  0x50   : > { %268 = vst [vmem:[%s669_s22 + $0x50] sm:$0xff] %v255_v38  ;;  %269 = vst [vmem:[%s669_s22 + $0x58] sm:$0xff] %v256_v39 }
  0x51   : > { %270 = vst [vmem:[%s669_s22 + $0x60] sm:$0xff] %v257_v40 }
  0x52   : > { %s764_s26 = smov (!%p281_p6, %s280_s26), 13 }
  0x53   : > { %s688_s27 = sshll.u32 %s764_s26, 7 }
  0x54   : > { %s285_s28 = ssub.s32 1664, %s688_s27 }
  0x55   : > { %286 = vsyncadd %s272_s20, %s285_s28  ;;  %p376_p10 = scmp.ne.s32.totalorder %s688_s27, 0  ;;  %s383_s23 = smul.u32 1664, %s572_s16 }
  0x56   : > { %s291_s30 = sshll.u32 %s669_s22, 4  ;;  %s528_s17 = smov [#allocation5]   ;;  %s701_s30 = int_to_ptr.vmem [resolvable:$true] %s291_s30 }
  0x57   : > { %s699_s8 = scalar_lea.hbm %s750_s3, %s383_s23  ;;  %s457_s11 = scalar_lea.vmem %s701_s30, %s688_s27 }
  0x58   : > { %p458_p9 = scmp.ne.s32.totalorder %s701_s30, %s457_s11  ;;  %s461_s19 = sshll.u32 %s528_s17, 4  ;;  %s462_s19 = int_to_ptr.vmem [resolvable:$false] %s461_s19 }
  0x59   : > { %s463_s16 = scalar_lea.vmem %s462_s19, 3328  ;;  %p464_p12 = scmp.lt.s32.totalorder %s701_s30, %s462_s19 }
  0x5a   : > { %p459_p11 = pnand %p458_p9, %p376_p10  ;;  %p465_p0 = scmp.lt.s32.totalorder %s463_s16, %s457_s11 }
  0x5c   : > { %p460_p13 = pneg %p459_p11  ;;  %p466_p1 = por %p465_p0, %p464_p12 }
  0x5e   : > { %p467_p3 = pnand %p466_p1, %p460_p13 }
  0x60   : > { %470 = shalt.err (!%p467_p3)
}
  0x61   : > { %s471_s29 = scalar_lea.hbm %s699_s8, %s688_s27  ;;  %s475_s10 = scalar_lea.hbm %s750_s3, 3200 }
  0x62   : > { %p472_p4 = scmp.ne.s32.totalorder %s699_s8, %s471_s29  ;;  %p476_p7 = scmp.lt.u32.totalorder %s699_s8, %s750_s3 }
  0x63   : > { %p477_p8 = scmp.lt.u32.totalorder %s475_s10, %s471_s29  ;;  %p479_p9 = scmp.lt.u32.totalorder %s471_s29, %s699_s8 }
  0x64   : > { %p473_p5 = pnand %p472_p4, %p376_p10 }
  0x65   : > { %p478_p6 = por %p477_p8, %p476_p7 }
  0x66   : > { %p474_p2 = pneg %p473_p5 }
  0x67   : > { %p480_p11 = por %p479_p9, %p478_p6 }
  0x69   : > { %p481_p13 = pnand %p480_p11, %p474_p2 }
  0x6b   : > { %484 = shalt.err (!%p481_p13)
}
  0x6c   : > { %s529_s26 = smov 128   ;;  %s530_s28 = smov 8  }
  0x6d   : > { %297 = dma.vmem_to_hbm [thread:$0]  (%p376_p10), %s701_s30, %s688_s27, %s699_s8, %s272_s20, %s529_s26, %s529_s26, %s530_s28  }
  0x6e PF: > { %s306_s23 = sand.u32 1, %s511_s12   ;;  %p755_p12 = scmp.ne.s32.totalorder %s754_s24, 0 }
  0x6f   : > { %p756_p0 = scmp.ge.s32.totalorder %s523_s15, 2  ;;  %s307_s5 = scalar_lea.sflag [#allocation4], %s306_s23 }
  0x71   : > { %p389_p1 = pnand %p756_p0, %p755_p12 }
  0x73   : > { %506 = dma.done.wait (!%p389_p1), %s307_s5, 1664  }
  0x74   : > { %508 = vsyncadd (!%p389_p1), %s307_s5, 4294965632  ;;  %p16_p3 = scmp.ge.s32.totalorder %s576_s18, 4   ;;  %s757_s12 = smov %s515_s13 }
  0x75   : > { %s758_s13 = smov %s519_s14  ;;  %s759_s14 = smov %s588_s21 }
  0x76   : > { %s760_s15 = smov %s576_s18  ;;  %18 = sbr.rel (!%p16_p3) target bundleno = 5 (0x5), region = 77 }
  0x7d   :  { %312 = vsyncpa [#allocation3], 1 }
  0x7e   :  { %314 = vsyncpa [#allocation3 + $0x1], 1 }
  0x7f   :  { %315 = vsyncpa [#allocation4], 1 }
  0x80   :  { %317 = vsyncpa [#allocation4 + $0x1], 1 }

</bundles_post_ra>
